<compile_context>
chip_gen: v7x
topology: tpu7x:2x2x1
jax: 0.10.0
libtpu: 0.0.40
codegen_flags: <defaults>
</compile_context>

<pallas_src>
import jax
import jax.numpy as jnp
from jax.experimental import pallas as pl
from jax.experimental.pallas import tpu as pltpu


# ----------------------------- Pallas kernel --------------------------------
def _fused_conv_tanh_kernel(x_ref, wc_ref, bc_ref, o_ref):
    """o = tanh(x @ Wc + bc)  — single MXU contraction + EUP tanh.

    x_ref : (TB, K_pad)       flattened (zero-padded) input images
    wc_ref: (K_pad, OUT_pad)  fused conv1∘conv2 weight matrix (resident)
    bc_ref: (1, OUT_pad)      fused bias row (resident)
    o_ref : (TB, OUT_pad)     lane-dense output tile
    """
    acc = jnp.dot(x_ref[...], wc_ref[...], preferred_element_type=jnp.float32)
    o_ref[...] = jnp.tanh(acc + bc_ref[...]).astype(o_ref.dtype)


# --------------------------- weight-only transforms --------------------------
def _conv_out_dim(n, k, stride, padding):
    return (n + 2 * padding - k) // stride + 1


def _conv_weight_matrix(w, hin, win, stride, padding):
    """Dense (Hin*Win, OH*OW) matrix equivalent of a 1->1 channel Conv2d.

    M[(r, c), (i, j)] = w[u, v]  with u = r + padding - stride*i,
                                      v = c + padding - stride*j
    when 0 <= u, v < K, else 0.  Conv zero padding is represented by the zeros
    of M (no activation padding needed).
    """
    k = w.shape[-1]
    oh = _conv_out_dim(hin, k, stride, padding)
    ow = _conv_out_dim(win, k, stride, padding)
    u = jnp.arange(hin)[:, None] + padding - stride * jnp.arange(oh)[None, :]
    v = jnp.arange(win)[:, None] + padding - stride * jnp.arange(ow)[None, :]
    uo = u[:, None, :, None]          # (Hin, 1, OH, 1)
    vo = v[None, :, None, :]          # (1, Win, 1, OW)
    valid = (uo >= 0) & (uo < k) & (vo >= 0) & (vo < k)
    vals = w[jnp.clip(uo, 0, k - 1), jnp.clip(vo, 0, k - 1)]
    m = jnp.where(valid, vals, jnp.float32(0.0))
    return m.reshape(hin * win, oh * ow).astype(jnp.float32)


def _round_up(x, m):
    return ((x + m - 1) // m) * m


def _choose_batch_tile(n):
    """Prefer >=2 'parallel' grid steps (v7x has 2 TCs) when the batch allows
    it, with tiles big enough to amortize per-step overhead and feed MXU rows."""
    for t in (256, 128, 64, 32, 16, 8):
        if n % t == 0 and n // t >= 2:
            return t, n
    if n <= 256:
        return n, n                      # one full-extent block, no batch pad
    return 256, _round_up(n, 256)        # pad batch, slice rows afterwards


# ------------------------------- model factory -------------------------------
def make_model_tanh(w1, b1, w2, b2, h, w):
    """One-time prep: build the fused weight matrix / bias, return a jitted
    forward.  (Toeplitz construction + GEMM fusion never runs per call.)"""
    oh1 = _conv_out_dim(h, 15, 2, 0)
    ow1 = _conv_out_dim(w, 15, 2, 0)
    oh2 = _conv_out_dim(oh1, 8, 3, 15)
    ow2 = _conv_out_dim(ow1, 8, 3, 15)

    k = h * w
    out = oh2 * ow2
    k_pad = _round_up(k, 128)            # 1089 -> 1152, aligned MXU K tiling
    out_pad = _round_up(out, 128)        # 121  -> 128, lane-dense stores

    m1 = _conv_weight_matrix(w1[0, 0], h, w, stride=2, padding=0)       # (K, 100)
    m2 = _conv_weight_matrix(w2[0, 0], oh1, ow1, stride=3, padding=15)  # (100, 121)

    # Collapse both convs + biases:  x@M1@M2 + b1*colsum(M2) + b2
    wc = jnp.dot(m1, m2, preferred_element_type=jnp.float32)            # (K, OUT)
    bc = b1.reshape(()) * jnp.sum(m2, axis=0) + b2.reshape(())          # (OUT,)

    wc_p = jnp.zeros((k_pad, out_pad), jnp.float32).at[:k, :out].set(wc)
    bc_p = jnp.zeros((1, out_pad), jnp.float32).at[0, :out].set(bc)
    wc_p = jax.block_until_ready(wc_p)
    bc_p = jax.block_until_ready(bc_p)

    @jax.jit
    def forward(x):
        n = x.shape[0]
        assert x.shape[1] == 1 and x.shape[2] == h and x.shape[3] == w

        xf = x.reshape(n, k).astype(jnp.float32)
        if k_pad != k:
            xf = jnp.pad(xf, ((0, 0), (0, k_pad - k)))   # tiny, aligns K lanes

        batch_tile, n_pad = _choose_batch_tile(n)
        if n_pad != n:
            xf = jnp.pad(xf, ((0, n_pad - n), (0, 0)))

        y = pl.pallas_call(
            _fused_conv_tanh_kernel,
            out_shape=jax.ShapeDtypeStruct((n_pad, out_pad), jnp.float32),
            grid=(n_pad // batch_tile,),
            in_specs=[
                pl.BlockSpec((batch_tile, k_pad), lambda i: (i, 0)),   # x tile
                pl.BlockSpec((k_pad, out_pad), lambda i: (0, 0)),      # Wc resident
                pl.BlockSpec((1, out_pad), lambda i: (0, 0)),          # bc resident
            ],
            out_specs=pl.BlockSpec((batch_tile, out_pad), lambda i: (i, 0)),
            compiler_params=pltpu.CompilerParams(
                dimension_semantics=("parallel",)),
        )(xf, wc_p, bc_p)

        y = y[:n, :out]                  # drop pad rows / lane-pad columns
        return y.reshape(n, 1, oh2, ow2)

    return forward


# --------------------------- pure-JAX reference -------------------------------
def reference_forward(x, w1, b1, w2, b2):
    dn = jax.lax.conv_dimension_numbers(x.shape, w1.shape, ("NCHW", "OIHW", "NCHW"))
    y = jax.lax.conv_general_dilated(x, w1, (2, 2), "VALID", dimension_numbers=dn)
    y = y + b1.reshape(1, 1, 1, 1)
    y = jax.lax.conv_general_dilated(y, w2, (3, 3), [(15, 15), (15, 15)],
                                     dimension_numbers=dn)
    y = y + b2.reshape(1, 1, 1, 1)
    return jnp.tanh(y)


if __name__ == "__main__":
    key = jax.random.PRNGKey(0)
    kx, k1w, k1b, k2w, k2b = jax.random.split(key, 5)

    # Deterministic parameter init (PyTorch-style uniform +/- 1/sqrt(fan_in)).
    fan1 = 1 * 15 * 15
    fan2 = 1 * 8 * 8
    w1 = jax.random.uniform(k1w, (1, 1, 15, 15), jnp.float32,
                            -1.0 / fan1 ** 0.5, 1.0 / fan1 ** 0.5)
    b1 = jax.random.uniform(k1b, (1,), jnp.float32,
                            -1.0 / fan1 ** 0.5, 1.0 / fan1 ** 0.5)
    w2 = jax.random.uniform(k2w, (1, 1, 8, 8), jnp.float32,
                            -1.0 / fan2 ** 0.5, 1.0 / fan2 ** 0.5)
    b2 = jax.random.uniform(k2b, (1,), jnp.float32,
                            -1.0 / fan2 ** 0.5, 1.0 / fan2 ** 0.5)

    # Input: conv1 kernel is 15, so spatial must be >= 15; in-channels must be 1.
    H = W = 33
    x = jax.random.normal(kx, (2, 1, H, W), jnp.float32)

    forward = make_model_tanh(w1, b1, w2, b2, H, W)   # one-time weight prep
    out = forward(x)
    out = jax.block_until_ready(out)

    ref = reference_forward(x, w1, b1, w2, b2)
    assert out.shape == ref.shape, (out.shape, ref.shape)
    assert jnp.max(jnp.abs(out - ref)) < 1e-4

    print("KERNEL_OK")
</pallas_src>

<mosaic_0001>
module attributes {stable_mosaic.version = 11 : i64} {
  func.func @_fused_conv_tanh_kernel(%arg0: i32, %arg1: memref<2x1152xf32, #tpu.memory_space<vmem>>, %arg2: memref<1152x128xf32, #tpu.memory_space<vmem>>, %arg3: memref<1x128xf32, #tpu.memory_space<vmem>>, %arg4: memref<2x128xf32, #tpu.memory_space<vmem>>) attributes {dimension_semantics = [#tpu.dimension_semantics<parallel>], iteration_bounds = array<i64: 1>, scalar_prefetch = 0 : i64, scratch_operands = 0 : i64, tpu.core_type = #tpu.core_type<tc>, window_params = [{transform_indices = @transform_0, window_bounds = array<i64: 2, 1152>}, {pipeline_mode = #tpu.pipeline_mode<synchronous>, transform_indices = @transform_1, window_bounds = array<i64: 1152, 128>}, {pipeline_mode = #tpu.pipeline_mode<synchronous>, transform_indices = @transform_2, window_bounds = array<i64: 1, 128>}, {transform_indices = @transform_3, window_bounds = array<i64: 2, 128>}]} {
    %c0 = arith.constant 0 : index
    %c0_0 = arith.constant 0 : index
    %0 = vector.load %arg1[%c0, %c0_0] : memref<2x1152xf32, #tpu.memory_space<vmem>>, vector<2x1152xf32>
    %c0_1 = arith.constant 0 : index
    %c0_2 = arith.constant 0 : index
    %1 = vector.load %arg2[%c0_1, %c0_2] : memref<1152x128xf32, #tpu.memory_space<vmem>>, vector<1152x128xf32>
    %cst = arith.constant dense<0.000000e+00> : vector<2x128xf32>
    %2 = tpu.matmul %0, %1, %cst {dimension_numbers = #tpu.dot_dimension_numbers<[1], [0], [0], [1], [0, 0, 1, 1], [], []>} : vector<2x1152xf32>, vector<1152x128xf32>, vector<2x128xf32> -> vector<2x128xf32>
    %c0_3 = arith.constant 0 : index
    %c0_4 = arith.constant 0 : index
    %3 = vector.load %arg3[%c0_3, %c0_4] : memref<1x128xf32, #tpu.memory_space<vmem>>, vector<1x128xf32>
    %4 = vector.broadcast %3 : vector<1x128xf32> to vector<2x128xf32>
    %5 = arith.addf %2, %4 : vector<2x128xf32>
    %6 = math.tanh %5 : vector<2x128xf32>
    %c0_5 = arith.constant 0 : index
    %c0_6 = arith.constant 0 : index
    %7 = vector.load %arg4[%c0_5, %c0_6] : memref<2x128xf32, #tpu.memory_space<vmem>>, vector<2x128xf32>
    tpu.vector_store %arg4[%c0_5, %c0_6], %6 {strides = array<i32>} : memref<2x128xf32, #tpu.memory_space<vmem>>, vector<2x128xf32>,
    return
  }
  func.func @transform_0(%arg0: i32) -> (i32, i32) {
    %c0_i32 = arith.constant 0 : i32
    %c0_i32_0 = arith.constant 0 : i32
    return %arg0, %c0_i32 : i32, i32
  }
  func.func @transform_1(%arg0: i32) -> (i32, i32) {
    %c0_i32 = arith.constant 0 : i32
    %c0_i32_0 = arith.constant 0 : i32
    %c0_i32_1 = arith.constant 0 : i32
    return %c0_i32, %c0_i32_0 : i32, i32
  }
  func.func @transform_2(%arg0: i32) -> (i32, i32) {
    %c0_i32 = arith.constant 0 : i32
    %c0_i32_0 = arith.constant 0 : i32
    %c0_i32_1 = arith.constant 0 : i32
    return %c0_i32, %c0_i32_0 : i32, i32
  }
  func.func @transform_3(%arg0: i32) -> (i32, i32) {
    %c0_i32 = arith.constant 0 : i32
    %c0_i32_0 = arith.constant 0 : i32
    return %arg0, %c0_i32 : i32, i32
  }
}

</mosaic_0001>

<bundles_post_ra>
// kernel: forward.1
= control target key start
LH: loop header
LB: loop body
LE: loop exit
PB: predicated region body
PF: predicated region fallthrough
CT: control target
= control target key end

     0   :  { %8 = vsyncpa [#allocation3], 0  ;;  %s973_s12 = smov [#allocation2]   ;;  %s1043_s0 = inlined_call_operand.vmem [shape: f32[2,1152], index: 0, kind: input, shape index: {}]   ;;  %s1044_s1 = inlined_call_operand.hbm [shape: f32[1152,128], index: 1, kind: input, shape index: {}]   ;;  %s1045_s2 = inlined_call_operand.vmem [shape: f32[1,128], index: 2, kind: input, shape index: {}]   ;;  %s1046_s3 = inlined_call_operand.vmem [shape: f32[2,128], index: 3, kind: output, shape index: {}]  }
   0x1   :  { %s16_s13 = sshll.u32 %s973_s12, 4  ;;  %s949_s16 = scalar_lea.hbm %s1044_s1, 18432  ;;  %s17_s13 = int_to_ptr.vmem [resolvable:$true] %s16_s13 }
   0x2   :  { %p950_p0 = scmp.ne.s32.totalorder %s1044_s1, %s949_s16  ;;  %p953_p1 = scmp.lt.u32.totalorder %s949_s16, %s1044_s1 }
   0x4   :  { %p955_p2 = pnand %p953_p1, %p950_p0 }
   0x6   :  { %958 = shalt.err (!%p955_p2)
}
   0x7   :  { %s959_s21 = scalar_lea.vmem %s17_s13, 18432  ;;  %p964_p4 = scmp.lt.s32.totalorder %s17_s13, %s17_s13 }
   0x8   :  { %p960_p3 = scmp.ne.s32.totalorder %s17_s13, %s959_s21  ;;  %p965_p5 = scmp.lt.s32.totalorder %s959_s21, %s959_s21 }
   0xa   :  { %p966_p6 = por %p965_p5, %p964_p4 }
   0xc   :  { %p967_p7 = pnand %p966_p6, %p960_p3 }
   0xe   :  { %970 = shalt.err (!%p967_p7)
}
   0xf   :  { %s974_s22 = smov 128   ;;  %s975_s23 = smov 8  }
  0x10   :  { %22 = dma.hbm_to_vmem [thread:$0]  %s1044_s1, 18432, %s17_s13, [#allocation3], %s974_s22, %s974_s22, %s975_s23  }
  0x11   :  { %971 = dma.done.wait [#allocation3], 18432  }
  0x12   :  { %972 = vsyncadd [#allocation3], 4294948864  ;;  %v47_v0 = vld [vmem:[#allocation2 + $0x80] sm:$0xff]  ;;  %v48_v1 = vld [vmem:[#allocation2 + $0x88] sm:$0xff]  ;;  %v976_v43 = vmov 1983009808   ;;  %v189_v45 = vlaneseq }
  0x13   :  { %v31_v2 = vld [vmem:[#allocation2] sm:$0xff]  ;;  %v786_v3 = vpack.c.bf16 %v48_v1, %v47_v0  ;;  %v32_v4 = vld [vmem:[#allocation2 + $0x8] sm:$0xff]  ;;  %v49_v11 = vld [vmem:[#allocation2 + $0x90] sm:$0xff]  ;;  %v187_v44 = vunpack.c.l.s4 %v976_v43  ;;  %vm978_vm0 = vmmov 0  }
  0x14   :  { %v79_v5 = vld [vmem:[#allocation2 + $0x180] sm:$0xff]  ;;  %v80_v6 = vld [vmem:[#allocation2 + $0x188] sm:$0xff]  ;;  %v788_v7 = vpack.c.bf16 %v32_v4, %v31_v2  ;;  %v50_v13 = vld [vmem:[#allocation2 + $0x98] sm:$0xff]  ;;  %v190_v60 = vshrl.u32 %v189_v45, 7 }
  0x15   :  { %v818_v8 = vpack.c.bf16 %v80_v6, %v79_v5  ;;  %v63_v9 = vld [vmem:[#allocation2 + $0x100] sm:$0xff]  ;;  %v64_v10 = vld [vmem:[#allocation2 + $0x108] sm:$0xff]  ;;  %787 = vmatprep.subr.bf16.mxu0 %v786_v3  ;;  %v33_v14 = vld [vmem:[#allocation2 + $0x10] sm:$0xff]  ;;  %v790_v16 = vpack.c.bf16 %v50_v13, %v49_v11  ;;  %v188_v59 = vunpack.c.0.s8 %v187_v44 }
  0x16   :  { %v820_v12 = vpack.c.bf16 %v64_v10, %v63_v9  ;;  %v34_v15 = vld [vmem:[#allocation2 + $0x18] sm:$0xff]  ;;  %789 = vmatpush3.bf16.msra.mxu0 %v788_v7  ;;  %v81_v18 = vld [vmem:[#allocation2 + $0x190] sm:$0xff]  ;;  %v51_v23 = vld [vmem:[#allocation2 + $0xa0] sm:$0xff] }
  0x17   :  { %819 = vmatprep.subr.bf16.mxu1 %v818_v8  ;;  %v792_v17 = vpack.c.bf16 %v34_v15, %v33_v14  ;;  %v82_v19 = vld [vmem:[#allocation2 + $0x198] sm:$0xff]  ;;  %v65_v20 = vld [vmem:[#allocation2 + $0x110] sm:$0xff]  ;;  %v52_v24 = vld [vmem:[#allocation2 + $0xa8] sm:$0xff]  ;;  %791 = vmatprep.subr.bf16.mxu0 %v790_v16  ;;  %v1012_v10 = vsub.s32 %v188_v59, %v190_v60 }
  0x18   :  { %821 = vmatpush3.bf16.msra.mxu1 %v820_v12  ;;  %v822_v21 = vpack.c.bf16 %v82_v19, %v81_v18  ;;  %v66_v22 = vld [vmem:[#allocation2 + $0x118] sm:$0xff]  ;;  %v794_v26 = vpack.c.bf16 %v52_v24, %v51_v23  ;;  %v35_v27 = vld [vmem:[#allocation2 + $0x20] sm:$0xff]  ;;  %v36_v28 = vld [vmem:[#allocation2 + $0x28] sm:$0xff] }
  0x19   :  { %v824_v25 = vpack.c.bf16 %v66_v22, %v65_v20  ;;  %v83_v29 = vld [vmem:[#allocation2 + $0x1a0] sm:$0xff]  ;;  %v84_v30 = vld [vmem:[#allocation2 + $0x1a8] sm:$0xff]  ;;  %v796_v33 = vpack.c.bf16 %v36_v28, %v35_v27  ;;  %v53_v35 = vld [vmem:[#allocation2 + $0xb0] sm:$0xff] }
  0x1a   :  { %823 = vmatprep.subr.bf16.mxu1 %v822_v21  ;;  %v67_v31 = vld [vmem:[#allocation2 + $0x120] sm:$0xff]  ;;  %v68_v32 = vld [vmem:[#allocation2 + $0x128] sm:$0xff]  ;;  %793 = vmatpush3.bf16.msra.mxu0 %v792_v17  ;;  %v826_v34 = vpack.c.bf16 %v84_v30, %v83_v29  ;;  %v54_v36 = vld [vmem:[#allocation2 + $0xb8] sm:$0xff] }
  0x1b   :  { %v37_v37 = vld [vmem:[#allocation2 + $0x30] sm:$0xff]  ;;  %795 = vmatprep.subr.bf16.mxu0 %v794_v26  ;;  %v828_v38 = vpack.c.bf16 %v68_v32, %v67_v31  ;;  %v798_v39 = vpack.c.bf16 %v54_v36, %v53_v35  ;;  %v38_v40 = vld [vmem:[#allocation2 + $0x38] sm:$0xff]  ;;  %v55_v49 = vld [vmem:[#allocation2 + $0xc0] sm:$0xff] }
  0x1c   :  { %825 = vmatpush3.bf16.msra.mxu1 %v824_v25  ;;  %v85_v41 = vld [vmem:[#allocation2 + $0x1b0] sm:$0xff]  ;;  %v86_v42 = vld [vmem:[#allocation2 + $0x1b8] sm:$0xff]  ;;  %v56_v50 = vld [vmem:[#allocation2 + $0xc8] sm:$0xff]  ;;  %v800_v51 = vpack.c.bf16 %v38_v40, %v37_v37 }
  0x1d   :  { %827 = vmatprep.subr.bf16.mxu1 %v826_v34  ;;  %v830_v46 = vpack.c.bf16 %v86_v42, %v85_v41  ;;  %v69_v47 = vld [vmem:[#allocation2 + $0x130] sm:$0xff]  ;;  %v70_v48 = vld [vmem:[#allocation2 + $0x138] sm:$0xff]  ;;  %v87_v52 = vld [vmem:[#allocation2 + $0x1c0] sm:$0xff]  ;;  %v802_v55 = vpack.c.bf16 %v56_v50, %v55_v49 }
  0x1e   :  { %797 = vmatpush3.bf16.msra.mxu0 %v796_v33  ;;  %v88_v53 = vld [vmem:[#allocation2 + $0x1c8] sm:$0xff]  ;;  %v832_v54 = vpack.c.bf16 %v70_v48, %v69_v47  ;;  %v39_v56 = vld [vmem:[#allocation2 + $0x40] sm:$0xff]  ;;  %v57_v63 = vld [vmem:[#allocation2 + $0xd0] sm:$0xff] }
  0x1f   :  { %799 = vmatprep.subr.bf16.mxu0 %v798_v39  ;;  %v40_v57 = vld [vmem:[#allocation2 + $0x48] sm:$0xff]  ;;  %v71_v58 = vld [vmem:[#allocation2 + $0x140] sm:$0xff]  ;;  %v834_v61 = vpack.c.bf16 %v88_v53, %v87_v52  ;;  %v58_v0 = vld [vmem:[#allocation2 + $0xd8] sm:$0xff] }
  0x20   :  { %829 = vmatpush3.bf16.msra.mxu1 %v828_v38  ;;  %v72_v62 = vld [vmem:[#allocation2 + $0x148] sm:$0xff]  ;;  %v89_v1 = vld [vmem:[#allocation2 + $0x1d0] sm:$0xff]  ;;  %v90_v2 = vld [vmem:[#allocation2 + $0x1d8] sm:$0xff]  ;;  %v804_v3 = vpack.c.bf16 %v40_v57, %v39_v56  ;;  %v806_v6 = vpack.c.bf16 %v58_v0, %v57_v63 }
  0x21   :  { %831 = vmatprep.subr.bf16.mxu1 %v830_v46  ;;  %v41_v4 = vld [vmem:[#allocation2 + $0x50] sm:$0xff]  ;;  %v836_v5 = vpack.c.bf16 %v72_v62, %v71_v58  ;;  %v42_v7 = vld [vmem:[#allocation2 + $0x58] sm:$0xff]  ;;  %v838_v11 = vpack.c.bf16 %v90_v2, %v89_v1  ;;  %v59_v12 = vld [vmem:[#allocation2 + $0xe0] sm:$0xff] }
  0x22   :  { %801 = vmatpush3.bf16.msra.mxu0 %v800_v51  ;;  %v73_v8 = vld [vmem:[#allocation2 + $0x150] sm:$0xff]  ;;  %v74_v9 = vld [vmem:[#allocation2 + $0x158] sm:$0xff]  ;;  %v60_v13 = vld [vmem:[#allocation2 + $0xe8] sm:$0xff]  ;;  %v808_v16 = vpack.c.bf16 %v42_v7, %v41_v4 }
  0x23   :  { %803 = vmatprep.subr.bf16.mxu0 %v802_v55  ;;  %v91_v14 = vld [vmem:[#allocation2 + $0x1e0] sm:$0xff]  ;;  %v92_v15 = vld [vmem:[#allocation2 + $0x1e8] sm:$0xff]  ;;  %v840_v17 = vpack.c.bf16 %v74_v9, %v73_v8  ;;  %v810_v19 = vpack.c.bf16 %v60_v13, %v59_v12  ;;  %v61_v27 = vld [vmem:[#allocation2 + $0xf0] sm:$0xff] }
  0x24   :  { %833 = vmatpush3.bf16.msra.mxu1 %v832_v54  ;;  %v28_v18 = vld [vmem:[%s1043_s0] sm:$0xff]  ;;  %v44_v21 = vld [vmem:[#allocation2 + $0x68] sm:$0xff]  ;;  %v842_v25 = vpack.c.bf16 %v92_v15, %v91_v14  ;;  %v62_v28 = vld [vmem:[#allocation2 + $0xf8] sm:$0xff] }
  0x25   :  { %835 = vmatprep.subr.bf16.mxu1 %v834_v61  ;;  %v43_v20 = vld [vmem:[#allocation2 + $0x60] sm:$0xff]  ;;  %v192_v23 = vrot.slane %v28_v18, %v1012_v10  ;;  %v185_v24 = vcombine.high %v28_v18, %v28_v18  ;;  %v76_v26 = vld [vmem:[#allocation2 + $0x168] sm:$0xff]  ;;  %v93_v29 = vld [vmem:[#allocation2 + $0x1f0] sm:$0xff]  ;;  %v814_v35 = vpack.c.bf16 %v62_v28, %v61_v27 }
  0x26   :  { %805 = vmatpush3.bf16.msra.mxu0 %v804_v3  ;;  %v75_v22 = vld [vmem:[#allocation2 + $0x160] sm:$0xff]  ;;  %v94_v30 = vld [vmem:[#allocation2 + $0x1f8] sm:$0xff]  ;;  %v812_v33 = vpack.c.bf16 %v44_v21, %v43_v20  ;;  %v45_v36 = vld [vmem:[#allocation2 + $0x70] sm:$0xff] }
  0x27   :  { %807 = vmatprep.subr.bf16.mxu0 %v806_v6  ;;  %v200_v31 = vcombine.high %v192_v23, %v192_v23  ;;  %v199_v32 = vrot.slane %v185_v24, %v1012_v10  ;;  %v844_v34 = vpack.c.bf16 %v76_v26, %v75_v22  ;;  %v46_v37 = vld [vmem:[#allocation2 + $0x78] sm:$0xff]  ;;  %v77_v38 = vld [vmem:[#allocation2 + $0x170] sm:$0xff]  ;;  %v846_v40 = vpack.c.bf16 %v94_v30, %v93_v29  ;;  %v111_v42 = vld [vmem:[#allocation2 + $0x280] sm:$0xff] }
  0x28   :  { %837 = vmatpush3.bf16.msra.mxu1 %v836_v5  ;;  %v78_v41 = vld [vmem:[#allocation2 + $0x178] sm:$0xff]  ;;  %v112_v43 = vld [vmem:[#allocation2 + $0x288] sm:$0xff]  ;;  %v143_v44 = vld [vmem:[#allocation2 + $0x380] sm:$0xff]  ;;  %v816_v46 = vpack.c.bf16 %v46_v37, %v45_v36 }
  0x29   :  { %839 = vmatprep.subr.bf16.mxu1 %v838_v11  ;;  %v201_v39 = vcombine.high %v199_v32, %v199_v32  ;;  %299 = vmatprep.mubr.f32.mxu0 %v200_v31  ;;  %v144_v45 = vld [vmem:[#allocation2 + $0x388] sm:$0xff]  ;;  %v848_v47 = vpack.c.bf16 %v78_v41, %v77_v38  ;;  %v850_v48 = vpack.c.bf16 %v112_v43, %v111_v42  ;;  %v95_v49 = vld [vmem:[#allocation2 + $0x200] sm:$0xff]  ;;  %v113_v54 = vld [vmem:[#allocation2 + $0x290] sm:$0xff] }
  0x2a   :  { %809 = vmatpush3.bf16.msra.mxu0 %v808_v16  ;;  %v96_v50 = vld [vmem:[#allocation2 + $0x208] sm:$0xff]  ;;  %v127_v51 = vld [vmem:[#allocation2 + $0x300] sm:$0xff]  ;;  %v882_v52 = vpack.c.bf16 %v144_v45, %v143_v44  ;;  %v114_v55 = vld [vmem:[#allocation2 + $0x298] sm:$0xff] }
  0x2b   :  { %811 = vmatprep.subr.bf16.mxu0 %v810_v19  ;;  %369 = vmatprep.mubr.f32.mxu1 %v201_v39  ;;  %v128_v53 = vld [vmem:[#allocation2 + $0x308] sm:$0xff]  ;;  %v145_v56 = vld [vmem:[#allocation2 + $0x390] sm:$0xff]  ;;  %v146_v57 = vld [vmem:[#allocation2 + $0x398] sm:$0xff]  ;;  %v852_v58 = vpack.c.bf16 %v96_v50, %v95_v49  ;;  %v854_v60 = vpack.c.bf16 %v114_v55, %v113_v54 }
  0x2c   :  { %841 = vmatpush3.bf16.msra.mxu1 %v840_v17  ;;  %v884_v59 = vpack.c.bf16 %v128_v53, %v127_v51  ;;  %v97_v61 = vld [vmem:[#allocation2 + $0x210] sm:$0xff]  ;;  %v98_v62 = vld [vmem:[#allocation2 + $0x218] sm:$0xff]  ;;  %v886_v0 = vpack.c.bf16 %v146_v57, %v145_v56  ;;  %v115_v2 = vld [vmem:[#allocation2 + $0x2a0] sm:$0xff] }
  0x2d   :  { %843 = vmatprep.subr.bf16.mxu1 %v842_v25  ;;  %v129_v63 = vld [vmem:[#allocation2 + $0x310] sm:$0xff]  ;;  %v130_v1 = vld [vmem:[#allocation2 + $0x318] sm:$0xff]  ;;  %v116_v3 = vld [vmem:[#allocation2 + $0x2a8] sm:$0xff]  ;;  %v856_v6 = vpack.c.bf16 %v98_v62, %v97_v61 }
  0x2e   :  { %813 = vmatpush3.bf16.msra.mxu0 %v812_v33  ;;  %v147_v4 = vld [vmem:[#allocation2 + $0x3a0] sm:$0xff]  ;;  %v148_v5 = vld [vmem:[#allocation2 + $0x3a8] sm:$0xff]  ;;  %v888_v7 = vpack.c.bf16 %v130_v1, %v129_v63  ;;  %v858_v8 = vpack.c.bf16 %v116_v3, %v115_v2  ;;  %v117_v15 = vld [vmem:[#allocation2 + $0x2b0] sm:$0xff] }
  0x2f   :  { %815 = vmatprep.subr.bf16.mxu0 %v814_v35  ;;  %v99_v9 = vld [vmem:[#allocation2 + $0x220] sm:$0xff]  ;;  %v100_v11 = vld [vmem:[#allocation2 + $0x228] sm:$0xff]  ;;  %v890_v13 = vpack.c.bf16 %v148_v5, %v147_v4  ;;  %v118_v16 = vld [vmem:[#allocation2 + $0x2b8] sm:$0xff] }
  0x30   :  { %845 = vmatpush3.bf16.msra.mxu1 %v844_v34  ;;  %v131_v12 = vld [vmem:[#allocation2 + $0x320] sm:$0xff]  ;;  %v132_v14 = vld [vmem:[#allocation2 + $0x328] sm:$0xff]  ;;  %v149_v17 = vld [vmem:[#allocation2 + $0x3b0] sm:$0xff]  ;;  %v860_v19 = vpack.c.bf16 %v100_v11, %v99_v9  ;;  %v862_v22 = vpack.c.bf16 %v118_v16, %v117_v15 }
  0x31   :  { %847 = vmatprep.subr.bf16.mxu1 %v846_v40  ;;  %v150_v18 = vld [vmem:[#allocation2 + $0x3b8] sm:$0xff]  ;;  %v101_v20 = vld [vmem:[#allocation2 + $0x230] sm:$0xff]  ;;  %v892_v21 = vpack.c.bf16 %v132_v14, %v131_v12  ;;  %v119_v27 = vld [vmem:[#allocation2 + $0x2c0] sm:$0xff] }
  0x32   :  { %817 = vmatpush3.bf16.msra.mxu0 %v816_v46  ;;  %v133_v24 = vld [vmem:[#allocation2 + $0x330] sm:$0xff]  ;;  %v134_v25 = vld [vmem:[#allocation2 + $0x338] sm:$0xff]  ;;  %v894_v26 = vpack.c.bf16 %v150_v18, %v149_v17  ;;  %v120_v28 = vld [vmem:[#allocation2 + $0x2c8] sm:$0xff] }
  0x33   :  { %851 = vmatprep.subr.bf16.mxu0 %v850_v48  ;;  %v29_v29 = vld [vmem:[%s1043_s0 + $0x8] sm:$0xff]  ;;  %v151_v30 = vld [vmem:[#allocation2 + $0x3c0] sm:$0xff]  ;;  %v896_v35 = vpack.c.bf16 %v134_v25, %v133_v24  ;;  %v866_v36 = vpack.c.bf16 %v120_v28, %v119_v27  ;;  %v121_v44 = vld [vmem:[#allocation2 + $0x2d0] sm:$0xff]  ;;  %v979_v28 = vmov 0.0  }
  0x34   :  { %849 = vmatpush3.bf16.msra.mxu1 %v848_v47  ;;  %v152_v31 = vld [vmem:[#allocation2 + $0x3c8] sm:$0xff]  ;;  %v202_v33 = vcombine.high %v29_v29, %v29_v29  ;;  %v103_v37 = vld [vmem:[#allocation2 + $0x240] sm:$0xff]  ;;  %v122_v45 = vld [vmem:[#allocation2 + $0x2d8] sm:$0xff] }
  0x35   :  { %883 = vmatprep.subr.bf16.mxu1 %v882_v52  ;;  %300 = vmatmul.mubr.f32.vlgmr.msra.gmra.mrb[0].mxu0 %v192_v23  ;;  %v102_v23 = vld [vmem:[#allocation2 + $0x238] sm:$0xff]  ;;  %v104_v38 = vld [vmem:[#allocation2 + $0x248] sm:$0xff]  ;;  %v135_v39 = vld [vmem:[#allocation2 + $0x340] sm:$0xff]  ;;  %v898_v42 = vpack.c.bf16 %v152_v31, %v151_v30  ;;  %v870_v51 = vpack.c.bf16 %v122_v45, %v121_v44 }
  0x36   :  { %853 = vmatpush3.bf16.msra.mxu0 %v852_v58  ;;  %v864_v34 = vpack.c.bf16 %v102_v23, %v101_v20  ;;  %v1028_v41 = vrot.slane %v202_v33, %v1012_v10  ;;  %v136_v43 = vld [vmem:[#allocation2 + $0x348] sm:$0xff]  ;;  %v153_v46 = vld [vmem:[#allocation2 + $0x3d0] sm:$0xff]  ;;  %v154_v47 = vld [vmem:[#allocation2 + $0x3d8] sm:$0xff]  ;;  %v868_v49 = vpack.c.bf16 %v104_v38, %v103_v37 }
  0x37   :  { %370 = vmatmul.mubr.f32.vlgmr.msra.gmra.mrb[0].mxu1 %v199_v32  ;;  %855 = vmatprep.subr.bf16.mxu0 %v854_v60  ;;  %v1023_v32 = vrot.slane %v29_v29, %v1012_v10  ;;  %v900_v50 = vpack.c.bf16 %v136_v43, %v135_v39  ;;  %v105_v52 = vld [vmem:[#allocation2 + $0x250] sm:$0xff]  ;;  %v106_v10 = vld [vmem:[#allocation2 + $0x258] sm:$0xff]  ;;  %v902_v54 = vpack.c.bf16 %v154_v47, %v153_v46  ;;  %v123_v56 = vld [vmem:[#allocation2 + $0x2e0] sm:$0xff] }
  0x38   :  { %885 = vmatpush3.bf16.msra.mxu1 %v884_v59  ;;  %v218_v48 = vcombine.high %v1028_v41, %v1028_v41  ;;  %v137_v53 = vld [vmem:[#allocation2 + $0x350] sm:$0xff]  ;;  %v138_v55 = vld [vmem:[#allocation2 + $0x358] sm:$0xff]  ;;  %v124_v57 = vld [vmem:[#allocation2 + $0x2e8] sm:$0xff]  ;;  %v872_v60 = vpack.c.bf16 %v106_v10, %v105_v52 }
  0x39   :  { %887 = vmatprep.subr.bf16.mxu1 %v886_v0  ;;  %v217_v40 = vcombine.high %v1023_v32, %v1023_v32  ;;  %v155_v58 = vld [vmem:[#allocation2 + $0x3e0] sm:$0xff]  ;;  %v156_v59 = vld [vmem:[#allocation2 + $0x3e8] sm:$0xff]  ;;  %v904_v61 = vpack.c.bf16 %v138_v55, %v137_v53  ;;  %v874_v62 = vpack.c.bf16 %v124_v57, %v123_v56  ;;  %v125_v4 = vld [vmem:[#allocation2 + $0x2f0] sm:$0xff] }
  0x3a   :  { %857 = vmatpush3.bf16.msra.mxu0 %v856_v6  ;;  %509 = vmatprep.mubr.f32.mxu1 %v218_v48  ;;  %v107_v63 = vld [vmem:[#allocation2 + $0x260] sm:$0xff]  ;;  %v108_v0 = vld [vmem:[#allocation2 + $0x268] sm:$0xff]  ;;  %v906_v2 = vpack.c.bf16 %v156_v59, %v155_v58  ;;  %v126_v5 = vld [vmem:[#allocation2 + $0x2f8] sm:$0xff] }
  0x3b   :  { %859 = vmatprep.subr.bf16.mxu0 %v858_v8  ;;  %439 = vmatprep.mubr.f32.mxu0 %v217_v40  ;;  %v139_v1 = vld [vmem:[#allocation2 + $0x360] sm:$0xff]  ;;  %v140_v3 = vld [vmem:[#allocation2 + $0x368] sm:$0xff]  ;;  %v157_v6 = vld [vmem:[#allocation2 + $0x3f0] sm:$0xff]  ;;  %v876_v8 = vpack.c.bf16 %v108_v0, %v107_v63  ;;  %v878_v11 = vpack.c.bf16 %v126_v5, %v125_v4 }
  0x3c   :  { %889 = vmatpush3.bf16.msra.mxu1 %v888_v7  ;;  %v158_v7 = vld [vmem:[#allocation2 + $0x3f8] sm:$0xff]  ;;  %v908_v9 = vpack.c.bf16 %v140_v3, %v139_v1  ;;  %v109_v12 = vld [vmem:[#allocation2 + $0x270] sm:$0xff]  ;;  %v160_v20 = vld [vmem:[#allocation2 + $0x408] sm:$0xff] }
  0x3d   :  { %891 = vmatprep.subr.bf16.mxu1 %v890_v13  ;;  %v110_v13 = vld [vmem:[#allocation2 + $0x278] sm:$0xff]  ;;  %v910_v14 = vpack.c.bf16 %v158_v7, %v157_v6  ;;  %v141_v15 = vld [vmem:[#allocation2 + $0x370] sm:$0xff]  ;;  %v164_v27 = vld [vmem:[#allocation2 + $0x428] sm:$0xff] }
  0x3e   :  { %861 = vmatpush3.bf16.msra.mxu0 %v860_v19  ;;  %v142_v16 = vld [vmem:[#allocation2 + $0x378] sm:$0xff]  ;;  %v880_v17 = vpack.c.bf16 %v110_v13, %v109_v12  ;;  %v159_v19 = vld [vmem:[#allocation2 + $0x400] sm:$0xff]  ;;  %v161_v23 = vld [vmem:[#allocation2 + $0x410] sm:$0xff] }
  0x3f   :  { %863 = vmatprep.subr.bf16.mxu0 %v862_v22  ;;  %v912_v18 = vpack.c.bf16 %v142_v16, %v141_v15  ;;  %v977_v22 = vmov 0.0|0.0   ;;  %v162_v24 = vld [vmem:[#allocation2 + $0x418] sm:$0xff]  ;;  %v165_v30 = vld [vmem:[#allocation2 + $0x430] sm:$0xff]  ;;  %v171_v39 = vld [vmem:[#allocation2 + $0x460] sm:$0xff] }
  0x40   :  { %893 = vmatpush3.bf16.msra.mxu1 %v892_v21  ;;  %v915_v21 = vpack.c.bf16 %v160_v20, %v159_v19  ;;  %v918_v25 = vpack.c.bf16 %v162_v24, %v161_v23  ;;  %v166_v31 = vld [vmem:[#allocation2 + $0x438] sm:$0xff]  ;;  %v172_v40 = vld [vmem:[#allocation2 + $0x468] sm:$0xff]  ;;  %v593_v45 = vld.sshfl [vmem:[%s1043_s0 + $0x10] sm:$0x3 pattern:$0x76325410] }
  0x41   :  { %895 = vmatprep.subr.bf16.mxu1 %v894_v26  ;;  %v163_v26 = vld [vmem:[#allocation2 + $0x420] sm:$0xff]  ;;  %v924_v33 = vpack.c.bf16 %v166_v31, %v165_v30  ;;  %v170_v37 = vld [vmem:[#allocation2 + $0x458] sm:$0xff] }
  0x42   :  { %865 = vmatpush3.bf16.msra.mxu0 %v864_v34  ;;  %v921_v29 = vpack.c.bf16 %v164_v27, %v163_v26  ;;  %v167_v34 = vld [vmem:[#allocation2 + $0x440] sm:$0xff]  ;;  %v174_v43 = vld [vmem:[#allocation2 + $0x478] sm:$0xff] }
  0x43   :  { %867 = vmatprep.subr.bf16.mxu0 %v866_v36  ;;  %v169_v36 = vld [vmem:[#allocation2 + $0x450] sm:$0xff]  ;;  %v592_v47 = vld [vmem:[%s1045_s2] ss:$0 sm:$0xff] }
  0x44   :  { %897 = vmatpush3.bf16.msra.mxu1 %v896_v35  ;;  %v930_v38 = vpack.c.bf16 %v170_v37, %v169_v36 }
  0x45   :  { %899 = vmatprep.subr.bf16.mxu1 %v898_v42  ;;  %v173_v42 = vld [vmem:[#allocation2 + $0x470] sm:$0xff] }
  0x46   :  { %869 = vmatpush3.bf16.msra.mxu0 %v868_v49  ;;  %v936_v44 = vpack.c.bf16 %v174_v43, %v173_v42 }
  0x47   :  { %871 = vmatprep.subr.bf16.mxu0 %v870_v51 }
  0x48   :  { %901 = vmatpush3.bf16.msra.mxu1 %v900_v50 }
  0x49   :  { %903 = vmatprep.subr.bf16.mxu1 %v902_v54 }
  0x4a   :  { %873 = vmatpush3.bf16.msra.mxu0 %v872_v60 }
  0x4b   :  { %875 = vmatprep.subr.bf16.mxu0 %v874_v62 }
  0x4c   :  { %905 = vmatpush3.bf16.msra.mxu1 %v904_v61 }
  0x4d   :  { %907 = vmatprep.subr.bf16.mxu1 %v906_v2 }
  0x4e   :  { %877 = vmatpush3.bf16.msra.mxu0 %v876_v8 }
  0x4f   :  { %879 = vmatprep.subr.bf16.mxu0 %v878_v11 }
  0x50   :  { %909 = vmatpush3.bf16.msra.mxu1 %v908_v9 }
  0x51   :  { %911 = vmatprep.subr.bf16.mxu1 %v910_v14 }
  0x52   :  { %881 = vmatpush3.bf16.msra.mxu0 %v880_v17 }
  0x53   :  { %914 = vmatprep.subr.bf16.mxu0 %v977_v22 }
  0x54   :  { %913 = vmatpush3.bf16.msra.mxu1 %v912_v18 }
  0x55   :  { %440 = vmatmul.mubr.f32.vlgmr.msra.gmra.mrb[2].mxu0 %v1023_v32  ;;  %v168_v32 = vld [vmem:[#allocation2 + $0x448] sm:$0xff] }
  0x56   :  { %916 = vmatpush3.bf16.msra.mxu0 %v915_v21  ;;  %783 = vmatprep.mubr.msk.f32.mxu0 %vm978_vm0, %v979_v28  ;;  %v927_v35 = vpack.c.bf16 %v168_v32, %v167_v34 }
  0x57   :  { %510 = vmatmul.mubr.f32.vlgmr.msra.gmra.mrb[2].mxu1 %v1028_v41  ;;  %917 = vmatprep.subr.bf16.mxu0 %v977_v22  ;;  %v933_v41 = vpack.c.bf16 %v172_v40, %v171_v39 }
  0x5a   :  { %919 = vmatpush3.bf16.msra.mxu0 %v918_v25 }
  0x5b   :  { %920 = vmatprep.subr.bf16.mxu0 %v977_v22 }
  0x5e   :  { %922 = vmatpush3.bf16.msra.mxu0 %v921_v29 }
  0x5f   :  { %923 = vmatprep.subr.bf16.mxu0 %v977_v22 }
  0x62   :  { %925 = vmatpush3.bf16.msra.mxu0 %v924_v33 }
  0x63   :  { %926 = vmatprep.subr.bf16.mxu0 %v977_v22 }
  0x66   :  { %928 = vmatpush3.bf16.msra.mxu0 %v927_v35 }
  0x67   :  { %929 = vmatprep.subr.bf16.mxu0 %v977_v22 }
  0x6a   :  { %931 = vmatpush3.bf16.msra.mxu0 %v930_v38 }
  0x6b   :  { %932 = vmatprep.subr.bf16.mxu0 %v977_v22 }
  0x6e   :  { %934 = vmatpush3.bf16.msra.mxu0 %v933_v41 }
  0x6f   :  { %935 = vmatprep.subr.bf16.mxu0 %v977_v22 }
  0x72   :  { %937 = vmatpush3.bf16.msra.mxu0 %v936_v44 }
  0x75   :  { %784 = vmatmul.mubr.f32.vlgmr.msra.gmra.mrb[4].mxu0 %v593_v45 }
 0x108   :  { %v626_v46 = vpop.f32.mrb[0].mxu0 }
 0x109   :  { %v627_v48 = vpop.f32.mrb[1].mxu0 }
 0x10a   :  { %v661_v49 = vpop.f32.mrb[0].mxu1  ;;  %v628_v50 = vadd.f32 %v627_v48, %v626_v46 }
 0x10b   :  { %v662_v51 = vpop.f32.mrb[1].mxu1 }
 0x10c   :  { %v663_v52 = vadd.f32 %v662_v51, %v661_v49  ;;  %v302_v10 = vadd.f32 %v628_v50, %v592_v47 }
 0x10e   :  { %v372_v53 = vadd.f32 %v663_v52, %v302_v10 }
 0x128   :  { %v696_v54 = vpop.f32.mrb[2].mxu0 }
 0x129   :  { %v697_v55 = vpop.f32.mrb[3].mxu0 }
 0x12a   :  { %v731_v56 = vpop.f32.mrb[2].mxu1  ;;  %v698_v57 = vadd.f32 %v697_v55, %v696_v54 }
 0x12b   :  { %v732_v58 = vpop.f32.mrb[3].mxu1 }
 0x12c   :  { %v733_v59 = vadd.f32 %v732_v58, %v731_v56  ;;  %v442_v60 = vadd.f32 %v698_v57, %v372_v53 }
 0x12e   :  { %v512_v61 = vadd.f32 %v733_v59, %v442_v60 }
 0x148   :  { %v581_v62 = vpop.f32.mrb[4].mxu0 }
 0x149   :  { %v582_v63 = vadd.f32 %v581_v62, %v512_v61  ;;  %v785_v0 = vpop.f32.mrb[5].mxu0 }
 0x14b   :  { %947 = vtanh.f32 %v582_v63 }
 0x155   :  { %v948_v1 = vpop.eup %947 }
 0x156   :  { %586 = vst [vmem:[%s1046_s3] sm:$0x3] %v948_v1 }
 0x157   :  { %591 = vsyncpa [#allocation3], 1 }

</bundles_post_ra>
